<compile_context>
chip_gen: v6e
topology: v6e:2x2x1
jax: 0.10.0
libtpu: 0.0.40
codegen_flags: <defaults>
</compile_context>

<pallas_src>
import functools

import jax
import jax.numpy as jnp
from jax.experimental import pallas as pl
from jax.experimental.pallas import tpu as pltpu


def attn_pred_kernel(h_ref, wo_ref, bo_ref, o_ref, *, compute_dtype):
    # h_ref: (Bb, T, K), wo_ref: (K, Cp), bo_ref: (1, Cp), o_ref: (Bb, Cp)
    h = h_ref[...]
    if h.dtype != compute_dtype:
        h = h.astype(compute_dtype)

    # Last timestep, kept 3-D (Bb, 1, K): its reuse over T is a cheap sublane
    # broadcast and T stays on the sublane axis for the whole softmax.
    s = h[:, -1:, :]

    # scores_bt = <h_bt, s_b>: VPU multiply + lane reduce over K, f32 accum.
    scores = jnp.sum(h * s, axis=-1, keepdims=True,
                     dtype=jnp.float32)                                  # (Bb,T,1)

    # Numerically-stable softmax over T (sublane reduce).  Weights stay
    # unnormalized; the 1/sum scale is folded into the pooled result below
    # (T x fewer multiplies).
    m = jnp.max(scores, axis=1, keepdims=True)                           # (Bb,1,1)
    e = jnp.exp(scores - m)                                              # (Bb,T,1)
    inv = pl.reciprocal(jnp.sum(e, axis=1, keepdims=True), approx=True)  # (Bb,1,1)

    # Attention-weighted pooling over time (sublane reduce), f32 accumulation.
    w = e.astype(compute_dtype)                                          # (Bb,T,1)
    pooled = jnp.sum(h * w, axis=1, dtype=jnp.float32)                   # (Bb,K)
    pooled = pooled * inv[:, 0, :]                                       # (Bb,K)

    # Linear head on the MXU; Cp is 128-padded so this matmul is non-degenerate
    # and the store below is lane-dense (unmasked vst).
    if compute_dtype == jnp.bfloat16:
        o = jnp.dot(pooled.astype(jnp.bfloat16), wo_ref[...],
                    preferred_element_type=jnp.float32)
    else:
        o = jnp.dot(pooled, wo_ref[...].astype(jnp.float32),
                    preferred_element_type=jnp.float32)
    o_ref[...] = (o + bo_ref[...].astype(jnp.float32)).astype(o_ref.dtype)


def _tpu_facts():
    """Best-effort chip introspection with conservative fallbacks."""
    vmem_phys = 64 << 20           # assume the smallest (v7x) VMEM if unknown
    multi_tc = False
    has_bf16_vpu = True
    kind = ""
    try:
        dev = jax.devices()[0]
        kind = str(getattr(dev, "device_kind", "")).lower()
        multi_tc = getattr(dev, "num_cores", 1) > 1
    except Exception:
        pass
    try:
        info = pltpu.get_tpu_info()
        vmem_phys = int(getattr(info, "vmem_capacity_bytes", 0)) or vmem_phys
    except Exception:
        if "v5" in kind or "v6" in kind:
            vmem_phys = 128 << 20
    if "v7" in kind or "7x" in kind:       # v7x: 2 TensorCores, 64 MiB VMEM/TC
        multi_tc = True
        vmem_phys = min(vmem_phys, 64 << 20)
    if "v5 lite" in kind or "v5e" in kind or "v5lite" in kind:
        has_bf16_vpu = False               # v5e VPU/EUP have no bf16 path
    return vmem_phys, multi_tc, has_bf16_vpu


def _choose_block_rows(B, row_bytes, multi_tc, block_rows, target_bytes):
    """Batch rows of h per grid step."""
    if block_rows is not None:
        return max(1, min(int(block_rows), B))
    cap = target_bytes // max(1, row_bytes)
    if cap >= B:
        # Whole batch fits in one target-sized block.  Split only on
        # multi-TensorCore chips (v7x) -- on v5e/v6e a second grid step is
        # pure overhead -- and only when both halves stay 8-row aligned so no
        # padding / partial block is needed.
        if multi_tc and B >= 16 and B % 16 == 0:
            return B // 2
        return B
    if cap < 8:
        # Rows of h are huge (long T*K); 8 rows is the minimum 8-aligned
        # output block once grid > 1.
        # TODO(synk): T-axis grid + online-softmax accumulators for sequences
        # where even a handful of rows of h do not fit VMEM comfortably.
        return min(8, B)
    # grid > 1: prefer an 8-aligned divisor of B near the target block size so
    # the batch is tiled exactly (no jnp.pad of h, no partial tail block).
    hi = (cap // 8) * 8
    lo = max(8, hi // 2)
    d = hi
    while d >= lo:
        if B % d == 0:
            return d
        d -= 8
    # No aligned divisor near the target: keep target-sized blocks; the last
    # grid step is a partial block (clipped tail DMA, masked tail stores) --
    # still no extra HBM pass over h.
    return hi


def _vmem_limit_bytes(bb, T, K, Cp, in_bytes, w_bytes, vmem_phys):
    blk_in = bb * T * K * in_bytes
    blk_f32 = bb * T * K * 4
    need = (2 * blk_in                 # double-buffered h input block
            + 3 * blk_f32              # in-kernel cast + elementwise temps (generous)
            + 2 * K * Cp * w_bytes     # resident (double-buffered) head weights
            + 2 * (bb + 1) * Cp * 4    # output block + bias
            + (8 << 20))               # compiler scratch / spill headroom
    return int(min(max(need, 32 << 20), vmem_phys - (2 << 20)))


def make_attention_predictor(wo, bo, *, block_rows=None, target_block_bytes=4 << 20):
    """Returns apply(h) -> (B, C).  The lane-dense (128-padded) copies of
    wo/bo are materialized here once, not on every call."""
    K, C = wo.shape
    assert bo.shape == (C,)
    Cp = max(128, pl.cdiv(C, 128) * 128)
    if Cp == C:
        wo_p, bo_p = wo, bo.reshape(1, C)
    else:
        wo_p = jnp.zeros((K, Cp), wo.dtype).at[:, :C].set(wo)
        bo_p = jnp.zeros((1, Cp), bo.dtype).at[0, :C].set(bo)

    vmem_phys, multi_tc, has_bf16_vpu = _tpu_facts()
    w_bytes = jnp.dtype(wo_p.dtype).itemsize

    def apply(h):
        B, T, K2 = h.shape
        assert K2 == K
        in_bytes = jnp.dtype(h.dtype).itemsize
        bb = _choose_block_rows(B, T * K * in_bytes, multi_tc, block_rows,
                                target_block_bytes)
        grid = pl.cdiv(B, bb)

        # bf16 elementwise math (with f32 accumulation) only on bf16-capable
        # VPUs (v6e/v7x); v5e and f32 inputs take the f32 path.
        if (h.dtype == jnp.bfloat16 and wo_p.dtype == jnp.bfloat16
                and has_bf16_vpu):
            compute_dtype = jnp.bfloat16
        else:
            compute_dtype = jnp.float32

        out = pl.pallas_call(
            functools.partial(attn_pred_kernel, compute_dtype=compute_dtype),
            out_shape=jax.ShapeDtypeStruct((B, Cp), h.dtype),
            grid_spec=pltpu.PrefetchScalarGridSpec(
                num_scalar_prefetch=0,
                grid=(grid,),
                in_specs=[
                    pl.BlockSpec((bb, T, K), lambda i: (i, 0, 0)),  # h rows
                    pl.BlockSpec((K, Cp), lambda i: (0, 0)),        # wo (resident)
                    pl.BlockSpec((1, Cp), lambda i: (0, 0)),        # bo (resident)
                ],
                out_specs=pl.BlockSpec((bb, Cp), lambda i: (i, 0)),  # lane-dense
            ),
            compiler_params=pltpu.CompilerParams(
                dimension_semantics=("parallel",),
                vmem_limit_bytes=_vmem_limit_bytes(
                    bb, T, K, Cp, in_bytes, w_bytes, vmem_phys),
            ),
        )(h, wo_p, bo_p)
        return out if Cp == C else out[:, :C]

    return apply


def reference(h, wo, bo):
    s = h[:, -1, :]                                      # (B, K)
    att = jnp.einsum('btk,bk->bt', h, s)
    att = jax.nn.softmax(att, axis=-1)
    pooled = jnp.einsum('btk,bt->bk', h, att)
    return jnp.einsum('bk,kj->bj', pooled, wo) + bo


if __name__ == "__main__":
    B, T, K, C = 2, 8, 32, 4   # batch, seq, hidden_size, class_num

    key = jax.random.PRNGKey(0)
    k_h, k_w = jax.random.split(key)

    h = jax.random.normal(k_h, (B, T, K), dtype=jnp.float32)

    # xavier_uniform_ on wo: bound = sqrt(6 / (fan_in + fan_out))
    bound = (6.0 / (K + C)) ** 0.5
    wo = jax.random.uniform(k_w, (K, C), minval=-bound, maxval=bound,
                            dtype=jnp.float32)
    bo = jnp.zeros((C,), dtype=jnp.float32)

    predict = make_attention_predictor(wo, bo)
    o = jax.block_until_ready(predict(h))

    o_ref = reference(h, wo, bo)
    assert o.shape == (B, C)
    # Tolerance ~2e-3 because softmax normalization uses the EUP approximate
    # reciprocal (pl.reciprocal(..., approx=True)).
    assert jnp.allclose(o, o_ref, atol=2e-3, rtol=2e-3)

    print("KERNEL_OK")
</pallas_src>

<mosaic_0001>
module attributes {stable_mosaic.version = 11 : i64} {
  func.func @attn_pred_kernel(%arg0: i32, %arg1: memref<2x8x32xf32, #tpu.memory_space<vmem>>, %arg2: memref<32x128xf32, #tpu.memory_space<vmem>>, %arg3: memref<1x128xf32, #tpu.memory_space<vmem>>, %arg4: memref<2x128xf32, #tpu.memory_space<vmem>>) attributes {dimension_semantics = [#tpu.dimension_semantics<parallel>], iteration_bounds = array<i64: 1>, scalar_prefetch = 0 : i64, scratch_operands = 0 : i64, tpu.core_type = #tpu.core_type<tc>, window_params = [{transform_indices = @transform_0, window_bounds = array<i64: 2, 8, 32>}, {pipeline_mode = #tpu.pipeline_mode<synchronous>, transform_indices = @transform_1, window_bounds = array<i64: 32, 128>}, {pipeline_mode = #tpu.pipeline_mode<synchronous>, transform_indices = @transform_2, window_bounds = array<i64: 1, 128>}, {transform_indices = @transform_3, window_bounds = array<i64: 2, 128>}]} {
    %c0 = arith.constant 0 : index
    %c0_0 = arith.constant 0 : index
    %c0_1 = arith.constant 0 : index
    %0 = vector.load %arg1[%c0, %c0_0, %c0_1] : memref<2x8x32xf32, #tpu.memory_space<vmem>>, vector<2x8x32xf32>
    %1 = vector.extract_strided_slice %0 {offsets = [0, 7, 0], sizes = [2, 1, 32], strides = [1, 1, 1]} : vector<2x8x32xf32> to vector<2x1x32xf32>
    %2 = vector.broadcast %1 : vector<2x1x32xf32> to vector<2x8x32xf32>
    %3 = arith.mulf %0, %2 : vector<2x8x32xf32>
    %cst = arith.constant dense<0.000000e+00> : vector<2x8xf32>
    %4 = vector.multi_reduction <add>, %3, %cst [2] : vector<2x8x32xf32> to vector<2x8xf32>
    %5 = vector.shape_cast %4 : vector<2x8xf32> to vector<2x8x1xf32>
    %cst_2 = arith.constant dense<0xFF800000> : vector<2x1xf32>
    %6 = vector.multi_reduction <maximumf>, %5, %cst_2 [1] : vector<2x8x1xf32> to vector<2x1xf32>
    %7 = vector.shape_cast %6 : vector<2x1xf32> to vector<2x1x1xf32>
    %8 = vector.broadcast %7 : vector<2x1x1xf32> to vector<2x8x1xf32>
    %9 = arith.subf %5, %8 : vector<2x8x1xf32>
    %10 = math.exp %9 : vector<2x8x1xf32>
    %cst_3 = arith.constant dense<0.000000e+00> : vector<2x1xf32>
    %11 = vector.multi_reduction <add>, %10, %cst_3 [1] : vector<2x8x1xf32> to vector<2x1xf32>
    %12 = vector.shape_cast %11 : vector<2x1xf32> to vector<2x1x1xf32>
    %13 = tpu.reciprocal %12 {approx = true} : vector<2x1x1xf32> -> vector<2x1x1xf32>
    %14 = vector.broadcast %10 : vector<2x8x1xf32> to vector<2x8x32xf32>
    %15 = arith.mulf %0, %14 : vector<2x8x32xf32>
    %cst_4 = arith.constant dense<0.000000e+00> : vector<2x32xf32>
    %16 = vector.multi_reduction <add>, %15, %cst_4 [1] : vector<2x8x32xf32> to vector<2x32xf32>
    %17 = vector.shape_cast %13 : vector<2x1x1xf32> to vector<2x1xf32>
    %18 = vector.broadcast %17 : vector<2x1xf32> to vector<2x32xf32>
    %19 = arith.mulf %16, %18 : vector<2x32xf32>
    %c0_5 = arith.constant 0 : index
    %c0_6 = arith.constant 0 : index
    %20 = vector.load %arg2[%c0_5, %c0_6] : memref<32x128xf32, #tpu.memory_space<vmem>>, vector<32x128xf32>
    %cst_7 = arith.constant dense<0.000000e+00> : vector<2x128xf32>
    %21 = tpu.matmul %19, %20, %cst_7 {dimension_numbers = #tpu.dot_dimension_numbers<[1], [0], [0], [1], [0, 0, 1, 1], [], []>} : vector<2x32xf32>, vector<32x128xf32>, vector<2x128xf32> -> vector<2x128xf32>
    %c0_8 = arith.constant 0 : index
    %c0_9 = arith.constant 0 : index
    %22 = vector.load %arg3[%c0_8, %c0_9] : memref<1x128xf32, #tpu.memory_space<vmem>>, vector<1x128xf32>
    %23 = vector.broadcast %22 : vector<1x128xf32> to vector<2x128xf32>
    %24 = arith.addf %21, %23 : vector<2x128xf32>
    %c0_10 = arith.constant 0 : index
    %c0_11 = arith.constant 0 : index
    %25 = vector.load %arg4[%c0_10, %c0_11] : memref<2x128xf32, #tpu.memory_space<vmem>>, vector<2x128xf32>
    tpu.vector_store %arg4[%c0_10, %c0_11], %24 {strides = array<i32>} : memref<2x128xf32, #tpu.memory_space<vmem>>, vector<2x128xf32>,
    return
  }
  func.func @transform_0(%arg0: i32) -> (i32, i32, i32) {
    %c0_i32 = arith.constant 0 : i32
    %c0_i32_0 = arith.constant 0 : i32
    %c0_i32_1 = arith.constant 0 : i32
    return %arg0, %c0_i32, %c0_i32_0 : i32, i32, i32
  }
  func.func @transform_1(%arg0: i32) -> (i32, i32) {
    %c0_i32 = arith.constant 0 : i32
    %c0_i32_0 = arith.constant 0 : i32
    %c0_i32_1 = arith.constant 0 : i32
    return %c0_i32, %c0_i32_0 : i32, i32
  }
  func.func @transform_2(%arg0: i32) -> (i32, i32) {
    %c0_i32 = arith.constant 0 : i32
    %c0_i32_0 = arith.constant 0 : i32
    %c0_i32_1 = arith.constant 0 : i32
    return %c0_i32, %c0_i32_0 : i32, i32
  }
  func.func @transform_3(%arg0: i32) -> (i32, i32) {
    %c0_i32 = arith.constant 0 : i32
    %c0_i32_0 = arith.constant 0 : i32
    return %arg0, %c0_i32 : i32, i32
  }
}

</mosaic_0001>

<bundles_post_ra>
// kernel: tpu_custom_call.1
= control target key start
LH: loop header
LB: loop body
LE: loop exit
PB: predicated region body
PF: predicated region fallthrough
CT: control target
= control target key end

     0   :  { %8 = vsyncpa [#allocation3], 0  ;;  %s359_s0 = inlined_call_operand.hbm [shape: f32[2,8,32], index: 0, kind: input, shape index: {}]   ;;  %s360_s1 = inlined_call_operand.hbm [shape: f32[32,128], index: 1, kind: input, shape index: {}]   ;;  %s361_s2 = inlined_call_operand.vmem [shape: f32[1,128], index: 2, kind: input, shape index: {}]   ;;  %s362_s3 = inlined_call_operand.hbm [shape: f32[2,128], index: 3, kind: output, shape index: {}]  }
   0x1   :  { %9 = vsyncpa [#allocation6], 0 }
   0x2   :  { %10 = vsyncpa [#allocation4], 0  ;;  %s315_s12 = smov [#allocation2]  }
   0x3   :  { %s16_s13 = sshll.u32 %s315_s12, 4  ;;  %s17_s13 = int_to_ptr.vmem [resolvable:$true] %s16_s13 }
   0x4   :  { %s257_s14 = scalar_lea.vmem %s17_s13, 256  ;;  %p262_p1 = scmp.lt.s32.totalorder %s17_s13, %s17_s13 }
   0x5   :  { %p258_p0 = scmp.ne.s32.totalorder %s17_s13, %s257_s14  ;;  %p263_p2 = scmp.lt.s32.totalorder %s257_s14, %s257_s14 }
   0x7   :  { %p264_p3 = por %p263_p2, %p262_p1 }
   0x9   :  { %p265_p4 = pnand %p264_p3, %p258_p0 }
   0xb   :  { %268 = shalt.err (!%p265_p4)
}
   0xc   :  { %s316_s15 = smov 128   ;;  %s317_s16 = smov 8  }
   0xd   :  { %22 = dma.hbm_to_vmem [thread:$0]  %s359_s0, 256, %s17_s13, [#allocation3], %s316_s15, %s316_s15, %s317_s16  }
   0xe   :  { %s318_s19 = smov [#allocation5]  }
   0xf   :  { %s28_s20 = sshll.u32 %s318_s19, 4  ;;  %s29_s20 = int_to_ptr.vmem [resolvable:$true] %s28_s20 }
  0x10   :  { %s277_s21 = scalar_lea.vmem %s29_s20, 512  ;;  %p282_p6 = scmp.lt.s32.totalorder %s29_s20, %s29_s20 }
  0x11   :  { %p278_p5 = scmp.ne.s32.totalorder %s29_s20, %s277_s21  ;;  %p283_p7 = scmp.lt.s32.totalorder %s277_s21, %s277_s21 }
  0x13   :  { %p284_p8 = por %p283_p7, %p282_p6 }
  0x15   :  { %p285_p9 = pnand %p284_p8, %p278_p5 }
  0x17   :  { %288 = shalt.err (!%p285_p9)
}
  0x18   :  { %34 = dma.hbm_to_vmem [thread:$0]  %s360_s1, 512, %s29_s20, [#allocation6], %s316_s15, %s316_s15, %s317_s16  }
  0x19   :  { %309 = dma.done.wait [#allocation3], 256  }
  0x1a   :  { %310 = vsyncadd [#allocation3], 4294967040 }
  0x1b   :  { %311 = dma.done.wait [#allocation6], 512  }
  0x1c   :  { %312 = vsyncadd [#allocation6], 4294966784  ;;  %v45_v0 = vlaneseq  ;;  %v43_v3 = vld [vmem:[#allocation2] sm:$0xff]  ;;  %v44_v4 = vld [vmem:[#allocation2 + $0x8] sm:$0xff]  ;;  %vm55_vm0 = vcmask 261120   ;;  %v319_v12 = vmov 0.0  }
  0x1d   :  { %v115_v11 = vld [vmem:[#allocation5 + $0x18] sm:$0xff]  ;;  %223 = vmatprep.subr.mxu0 %v319_v12  ;;  %v114_v13 = vld [vmem:[#allocation5 + $0x10] sm:$0xff]  ;;  %vm320_vm1 = vmmov 0   ;;  %v113_v14 = vld [vmem:[#allocation5 + $0x8] sm:$0xff]  ;;  %vm125_vm2 = vcmask 1041409   ;;  %s321_s24 = smov [#allocation7]  }
  0x1e   :  { %v46_v1 = vshrl.u32 %v45_v0, 7  ;;  %231 = vmatprep.mubr.msk.f32.mxu0 %vm320_vm1, %v319_v12  ;;  %224 = vmatpush3.msra.mxu0 %v115_v11  ;;  %v112_v15 = vld [vmem:[#allocation5] sm:$0xff]  ;;  %s206_s25 = sshll.u32 %s321_s24, 4  ;;  %s207_s25 = int_to_ptr.vmem [resolvable:$true] %s206_s25 }
  0x1f   :  { %225 = vmatprep.subr.mxu0 %v319_v12  ;;  %s289_s26 = scalar_lea.vmem %s207_s25, 32  ;;  %p294_p11 = scmp.lt.s32.totalorder %s207_s25, %s207_s25 }
  0x20   :  { %v47_v2 = vsub.s32 7, %v46_v1  ;;  %226 = vmatpush3.msra.mxu0 %v114_v13  ;;  %p290_p10 = scmp.ne.s32.totalorder %s207_s25, %s289_s26  ;;  %p295_p12 = scmp.lt.s32.totalorder %s289_s26, %s289_s26 }
  0x21   :  { %227 = vmatprep.subr.mxu0 %v319_v12 }
  0x22   :  { %v48_v5 = vrot.slane %v43_v3, %v47_v2  ;;  %v52_v6 = vrot.slane %v44_v4, %v47_v2  ;;  %228 = vmatpush3.msra.mxu0 %v113_v14  ;;  %p296_p13 = por %p295_p12, %p294_p11 }
  0x23   :  { %229 = vmatprep.subr.mxu0 %v319_v12 }
  0x24   :  { %v53_v7 = vmul.f32 %v48_v5, %v43_v3  ;;  %v54_v8 = vmul.f32 %v52_v6, %v44_v4  ;;  %230 = vmatpush3.msra.mxu0 %v112_v15  ;;  %v216_v5 = vld [vmem:[%s361_s2] ss:$0 sm:$0xff]  ;;  %p297_p0 = pnand %p296_p13, %p290_p10 }
  0x26   :  { %v56_v9 = vsel %vm55_vm0, %v53_v7, 0.0  ;;  %v59_v10 = vsel %vm55_vm0, %v54_v8, 0.0 }
  0x27   :  { %57 = vadd.xlane.f32.xlu0 %v56_v9 }
  0x2b   :  { %60 = vadd.xlane.f32.xlu0 %v59_v10 }
  0xb0   :  { %v58_v16 = vpop.xlane.xlu0 %57 }
  0xb1   :  { %v62_v17 = vrot.slane %v58_v16, 4 }
  0xb3   :  { %v63_v18 = vmax.f32 %v58_v16, %v62_v17 }
  0xb4   :  { %v61_v19 = vpop.xlane.xlu0 %60 }
  0xb5   :  { %v64_v20 = vrot.slane %v63_v18, 2  ;;  %v68_v21 = vrot.slane %v61_v19, 4 }
  0xb7   :  { %v65_v22 = vmax.f32 %v63_v18, %v64_v20  ;;  %v69_v23 = vmax.f32 %v61_v19, %v68_v21 }
  0xb9   :  { %v66_v24 = vrot.slane %v65_v22, 1  ;;  %v70_v25 = vrot.slane %v69_v23, 2 }
  0xbb   :  { %v67_v26 = vmax.f32 %v65_v22, %v66_v24  ;;  %v71_v27 = vmax.f32 %v69_v23, %v70_v25 }
  0xbd   :  { %v74_v28 = vsub.f32 %v58_v16, %v67_v26  ;;  %v72_v29 = vrot.slane %v71_v27, 1 }
  0xbf   :  { %v76_v30 = vmul.f32 1.442695, %v74_v28  ;;  %v73_v31 = vmax.f32 %v71_v27, %v72_v29 }
  0xc1   :  { %241 = vpow2.f32 %v76_v30  ;;  %v75_v32 = vsub.f32 %v61_v19, %v73_v31 }
  0xc3   :  { %v78_v33 = vmul.f32 1.442695, %v75_v32 }
  0xc5   :  { %243 = vpow2.f32 %v78_v33 }
  0xce   :  { %v242_v34 = vpop.eup %241 }
  0xcf   :  { %v80_v35 = vrot.slane %v242_v34, 4  ;;  %v94_v36 = vmul.f32 %v242_v34, %v43_v3 }
  0xd1   :  { %v81_v37 = vadd.f32 %v242_v34, %v80_v35  ;;  %v96_v42 = vsel %vm55_vm0, %v94_v36, 0.0 }
  0xd2   :  { %v244_v38 = vpop.eup %243  ;;  %v97_v48 = vrot.slane %v96_v42, 4 }
  0xd3   :  { %v82_v39 = vrot.slane %v81_v37, 2  ;;  %v86_v40 = vrot.slane %v244_v38, 4  ;;  %v95_v41 = vmul.f32 %v244_v38, %v44_v4 }
  0xd4   :  { %v98_v53 = vadd.f32 %v97_v48, %v96_v42 }
  0xd5   :  { %v83_v43 = vadd.f32 %v82_v39, %v81_v37  ;;  %v87_v44 = vadd.f32 %v244_v38, %v86_v40  ;;  %v103_v45 = vsel %vm55_vm0, %v95_v41, 0.0 }
  0xd6   :  { %v104_v49 = vrot.slane %v103_v45, 4  ;;  %v99_v56 = vrot.slane %v98_v53, 2 }
  0xd7   :  { %v84_v46 = vrot.slane %v83_v43, 1  ;;  %v88_v47 = vrot.slane %v87_v44, 2 }
  0xd8   :  { %v105_v54 = vadd.f32 %v104_v49, %v103_v45  ;;  %v100_v58 = vadd.f32 %v99_v56, %v98_v53 }
  0xd9   :  { %v85_v50 = vadd.f32 %v84_v46, %v83_v43  ;;  %v89_v51 = vadd.f32 %v88_v47, %v87_v44 }
  0xda   :  { %v106_v57 = vrot.slane %v105_v54, 2  ;;  %v101_v60 = vrot.slane %v100_v58, 1 }
  0xdb   :  { %v90_v52 = vrot.slane %v89_v51, 1  ;;  %245 = vrcp.f32 %v85_v50 }
  0xdc   :  { %v107_v59 = vadd.f32 %v106_v57, %v105_v54  ;;  %v102_v63 = vadd.f32 %v101_v60, %v100_v58 }
  0xdd   :  { %v91_v55 = vadd.f32 %v90_v52, %v89_v51 }
  0xde   :  { %v108_v61 = vrot.slane %v107_v59, 1 }
  0xdf   :  { %247 = vrcp.f32 %v91_v55 }
  0xe0   :  { %v109_v0 = vadd.f32 %v108_v61, %v107_v59 }
  0xe8   :  { %v246_v62 = vpop.eup %245 }
  0xe9   :  { %v110_v2 = vmul.f32 %v246_v62, %v102_v63 }
  0xec   :  { %v248_v1 = vpop.eup %247 }
  0xed   :  { %v111_v3 = vmul.f32 %v248_v1, %v109_v0 }
  0xef   :  { %v126_v4 = vsel %vm125_vm2, %v111_v3, %v110_v2 }
  0xf0   :  { %232 = vmatmul.mubr.msk.f32.vlgmr.msra.gmra.mxu0 %vm55_vm0, %v126_v4 }
 0x1b0   :  { %v195_v6 = vpop.f32.mrf.mxu0 }
 0x1b1   :  { %v196_v7 = vadd.f32 %v216_v5, %v195_v6 }
 0x1b2   :  { %v233_v8 = vpop.f32.mrf.mxu0 }
 0x1b3   :  { %199 = vst [vmem:[#allocation7] sm:$0x3] %v196_v7 }
 0x1b4   :  { %300 = shalt.err (!%p297_p0)
}
 0x1b5   :  { %209 = dma.vmem_to_hbm [thread:$0]  %s207_s25, 32, %s362_s3, [#allocation4]  }
 0x1b6   :  { %313 = dma.done.wait [#allocation4], 32  }
 0x1b7   :  { %314 = vsyncadd [#allocation4], 4294967264 }
 0x1b8   :  { %213 = vsyncpa [#allocation3], 1 }
 0x1b9   :  { %214 = vsyncpa [#allocation6], 1 }
 0x1ba   :  { %215 = vsyncpa [#allocation4], 1 }

</bundles_post_ra>
